<compile_context>
chip_gen: v7x
topology: tpu7x:2x2x1
jax: 0.10.0
libtpu: 0.0.40
codegen_flags: <defaults>
</compile_context>

<pallas_src>
import jax
import jax.numpy as jnp
from jax import lax
from jax.experimental import pallas as pl
from jax.experimental.pallas import tpu as pltpu

NUM_CHAMPIONS = 16
NUM_FEATURES = 12
NUM_SLOTS = 10

ONEHOT_W = NUM_SLOTS * NUM_CHAMPIONS          # 160
COMB_W = ONEHOT_W + 32                        # 192  (one-hot ++ processed feats)

# Lane-aligned offsets inside the packed bias operand (width 576).
_BF1_OFF = 0        # feature_layer Linear1 bias, 64 wide
_B1_OFF = 128       # output_layer Linear1 bias, 64 wide
_B2_OFF = 256       # output_layer Linear2 bias, 1 wide
_BF2_OFF = 384      # feature_layer Linear2 bias, padded to COMB_W lanes
_BIAS_W = _BF2_OFF + COMB_W                   # 576


def _round_up(n, m):
    return ((n + m - 1) // m) * m


def lol_onehot_kernel(x_ref, wf1_ref, wf2_ref, w1_ref, w2_ref, bias_ref, out_ref):
    TB = x_ref.shape[0]
    C = NUM_CHAMPIONS

    # Packed biases: static ref slices (lane-aligned, free).
    bf1 = bias_ref[:, _BF1_OFF:_BF1_OFF + 64]          # (1, 64)
    b1 = bias_ref[:, _B1_OFF:_B1_OFF + 64]             # (1, 64)
    b2 = bias_ref[:, _B2_OFF:_B2_OFF + 1]              # (1, 1)
    bf2 = bias_ref[:, _BF2_OFF:_BF2_OFF + COMB_W]      # (1, 192) zeros in 0:160

    # In-kernel split of the (TB, 10 + F) tile; clamp matches the torch forward.
    ids = jnp.clip(x_ref[:, :NUM_SLOTS].astype(jnp.int32), 0, C - 1)   # (TB, 10)
    feats = x_ref[:, NUM_SLOTS:].astype(jnp.bfloat16)                  # (TB, F)

    # feature_layer: Linear(F, 64) -> ReLU.
    h1 = jnp.maximum(
        jnp.dot(feats, wf1_ref[...], preferred_element_type=jnp.float32) + bf1,
        0.0)                                                           # (TB, 64) f32

    # feature_layer second Linear, pre-padded to 192 output lanes: weight cols
    # 0:159 are zero so lanes 0:159 stay exactly 0 and lanes 160:191 hold
    # relu(Linear(64,32)) -- already in "concatenated" position.
    h2f = jnp.maximum(
        jnp.dot(h1.astype(jnp.bfloat16), wf2_ref[...],
                preferred_element_type=jnp.float32) + bf2,
        0.0)                                                           # (TB, 192) f32

    # One-hot mask over lanes 0:159 (slot s occupies lanes s*16 .. s*16+15).
    # Targets never exceed 159, so lanes 160:191 stay False.
    slot_off = lax.broadcasted_iota(jnp.int32, (1, NUM_SLOTS), 1) * C  # (1, 10)
    targets = ids + slot_off                                           # (TB, 10)
    lane = lax.broadcasted_iota(jnp.int32, (TB, COMB_W), 1)            # (TB, 192)
    m = lane == targets[:, 0:1]
    for s in range(1, NUM_SLOTS):
        m = m | (lane == targets[:, s:s + 1])

    # combined = [one_hot(160) ++ relu(h2)(32)] in a single (TB, 192) tile.
    combined = jnp.where(m, 1.0, h2f).astype(jnp.bfloat16)             # (TB, 192)

    # output_layer Linear(192, 64) + ReLU: single K=192 MXU pass on v6e/v7x.
    z = jnp.maximum(
        jnp.dot(combined, w1_ref[...], preferred_element_type=jnp.float32) + b1,
        0.0)                                                           # (TB, 64) f32

    # output_layer Linear(64, 1) + Sigmoid.
    logit = jnp.dot(z.astype(jnp.bfloat16), w2_ref[...],
                    preferred_element_type=jnp.float32) + b2           # (TB, 1)
    out_ref[...] = jax.nn.sigmoid(logit)


def init_params(key, num_champions=NUM_CHAMPIONS, num_features=NUM_FEATURES):
    """Deterministic PyTorch-Linear-style init (uniform +-1/sqrt(fan_in))."""
    def linear(k, fan_in, fan_out):
        kw, kb = jax.random.split(k)
        bound = 1.0 / jnp.sqrt(float(fan_in))
        w = jax.random.uniform(kw, (fan_out, fan_in), jnp.float32, -bound, bound)
        b = jax.random.uniform(kb, (fan_out,), jnp.float32, -bound, bound)
        return w, b

    k0, k1, k2, k3 = jax.random.split(key, 4)
    wf1, bf1 = linear(k0, num_features, 64)
    wf2, bf2 = linear(k1, 64, 32)
    w1, b1 = linear(k2, NUM_SLOTS * num_champions + 32, 64)
    w2, b2 = linear(k3, 64, 1)
    return dict(wf1=wf1, bf1=bf1, wf2=wf2, bf2=bf2, w1=w1, b1=b1, w2=w2, b2=b2)


def lol_model_forward(x, params, *, batch_tile=2048):
    """x: (B, 10 + NUM_FEATURES) float32 -> (B, 1) float32 win probability."""
    B, D = x.shape
    assert D == NUM_SLOTS + NUM_FEATURES

    # Batch tiling: single exact tile for small batches (block == full dims,
    # no padding needed); otherwise a multiple-of-128 tile capped so large
    # batches always split into >= 2 grid steps (keeps both v7x cores busy).
    bt = max(128, _round_up(int(batch_tile), 128))
    if B <= 256:
        TB = B
    else:
        TB = min(bt, _round_up(pl.cdiv(B, 2), 128))
    n_tiles = pl.cdiv(B, TB)

    # Weights pre-transposed to (in, out), cast to bf16 for the MXU.
    wf1_t = params["wf1"].T.astype(jnp.bfloat16)                  # (F, 64)
    wf2_pad = jnp.zeros((64, COMB_W), jnp.bfloat16)
    wf2_pad = wf2_pad.at[:, ONEHOT_W:].set(params["wf2"].T.astype(jnp.bfloat16))
    w1_full = params["w1"].T.astype(jnp.bfloat16)                 # (192, 64)
    w2_col = params["w2"].T.astype(jnp.bfloat16)                  # (64, 1)

    # All biases packed into one lane-aligned f32 operand (stays f32: the
    # elementwise path is f32 for v5e safety).
    bias = jnp.zeros((1, _BIAS_W), jnp.float32)
    bias = bias.at[0, _BF1_OFF:_BF1_OFF + 64].set(params["bf1"].astype(jnp.float32))
    bias = bias.at[0, _B1_OFF:_B1_OFF + 64].set(params["b1"].astype(jnp.float32))
    bias = bias.at[0, _B2_OFF:_B2_OFF + 1].set(params["b2"].astype(jnp.float32))
    bias = bias.at[0, _BF2_OFF + ONEHOT_W:_BF2_OFF + COMB_W].set(
        params["bf2"].astype(jnp.float32))

    def resident(arr):
        # Full-array block, constant index -> stays VMEM-resident across steps.
        return pl.BlockSpec(arr.shape, lambda i: (0, 0))

    in_specs = [
        pl.BlockSpec((TB, D), lambda i: (i, 0)),                  # batch tile of x
        resident(wf1_t),
        resident(wf2_pad),
        resident(w1_full),
        resident(w2_col),
        resident(bias),
    ]
    out_spec = pl.BlockSpec((TB, 1), lambda i: (i, 0))

    # No wrapper-side padding: Pallas masks the ragged last block. OOB rows
    # read undefined data but ids are clamped in-kernel, rows are independent,
    # and OOB output writes are discarded.
    out = pl.pallas_call(
        lol_onehot_kernel,
        out_shape=jax.ShapeDtypeStruct((B, 1), jnp.float32),
        grid=(n_tiles,),
        in_specs=in_specs,
        out_specs=out_spec,
        compiler_params=pltpu.CompilerParams(
            dimension_semantics=("parallel",)),
    )(x, wf1_t, wf2_pad, w1_full, w2_col, bias)

    return out


def lol_model_reference(x, params):
    """Pure-JAX f32 reference mirroring the PyTorch forward."""
    champ = jnp.clip(x[:, :NUM_SLOTS].astype(jnp.int32), 0, NUM_CHAMPIONS - 1)
    feats = x[:, NUM_SLOTS:]
    one_hot = jax.nn.one_hot(champ, NUM_CHAMPIONS, dtype=jnp.float32)
    one_hot = one_hot.reshape(x.shape[0], -1)
    h = jax.nn.relu(feats @ params["wf1"].T + params["bf1"])
    h = jax.nn.relu(h @ params["wf2"].T + params["bf2"])
    comb = jnp.concatenate([one_hot, h], axis=1)
    z = jax.nn.relu(comb @ params["w1"].T + params["b1"])
    return jax.nn.sigmoid(z @ params["w2"].T + params["b2"])


if __name__ == "__main__":
    key = jax.random.PRNGKey(0)
    kp, kc, kf = jax.random.split(key, 3)
    params = init_params(kp)

    def make_x(k1, k2, b):
        champ = jax.random.randint(k1, (b, NUM_SLOTS), 0, NUM_CHAMPIONS).astype(jnp.float32)
        feats = jax.random.normal(k2, (b, NUM_FEATURES), jnp.float32)
        return jnp.concatenate([champ, feats], axis=1)            # (b, 22)

    # Small batch: single exact tile (block == full dims).
    x_small = make_x(kc, kf, 8)
    out_small = jax.block_until_ready(lol_model_forward(x_small, params))
    ref_small = lol_model_reference(x_small, params)
    assert out_small.shape == (8, 1)
    assert bool(jnp.all(jnp.isfinite(out_small)))
    assert float(jnp.max(jnp.abs(out_small - ref_small))) < 2e-2  # bf16 MXU tolerance

    # Larger, non-tile-multiple batch: exercises the multi-step grid and the
    # ragged (masked) last block without any wrapper-side padding.
    kc2, kf2 = jax.random.split(jax.random.PRNGKey(1))
    x_big = make_x(kc2, kf2, 600)
    out_big = jax.block_until_ready(lol_model_forward(x_big, params))
    ref_big = lol_model_reference(x_big, params)
    assert out_big.shape == (600, 1)
    assert bool(jnp.all(jnp.isfinite(out_big)))
    assert float(jnp.max(jnp.abs(out_big - ref_big))) < 2e-2

    print("KERNEL_OK")
</pallas_src>

<mosaic_0001>
module attributes {stable_mosaic.version = 11 : i64} {
  func.func @lol_onehot_kernel(%arg0: i32, %arg1: memref<8x22xf32, #tpu.memory_space<vmem>>, %arg2: memref<12x64xbf16, #tpu.memory_space<vmem>>, %arg3: memref<64x192xbf16, #tpu.memory_space<vmem>>, %arg4: memref<192x64xbf16, #tpu.memory_space<vmem>>, %arg5: memref<64x1xbf16, #tpu.memory_space<vmem>>, %arg6: memref<1x576xf32, #tpu.memory_space<vmem>>, %arg7: memref<8x1xf32, #tpu.memory_space<vmem>>) attributes {dimension_semantics = [#tpu.dimension_semantics<parallel>], iteration_bounds = array<i64: 1>, scalar_prefetch = 0 : i64, scratch_operands = 0 : i64, tpu.core_type = #tpu.core_type<tc>, window_params = [{transform_indices = @transform_0, window_bounds = array<i64: 8, 22>}, {pipeline_mode = #tpu.pipeline_mode<synchronous>, transform_indices = @transform_1, window_bounds = array<i64: 12, 64>}, {pipeline_mode = #tpu.pipeline_mode<synchronous>, transform_indices = @transform_2, window_bounds = array<i64: 64, 192>}, {pipeline_mode = #tpu.pipeline_mode<synchronous>, transform_indices = @transform_3, window_bounds = array<i64: 192, 64>}, {pipeline_mode = #tpu.pipeline_mode<synchronous>, transform_indices = @transform_4, window_bounds = array<i64: 64, 1>}, {pipeline_mode = #tpu.pipeline_mode<synchronous>, transform_indices = @transform_5, window_bounds = array<i64: 1, 576>}, {transform_indices = @transform_6, window_bounds = array<i64: 8, 1>}]} {
    %c0 = arith.constant 0 : index
    %c0_0 = arith.constant 0 : index
    %0 = vector.load %arg6[%c0, %c0_0] : memref<1x576xf32, #tpu.memory_space<vmem>>, vector<1x64xf32>
    %c0_1 = arith.constant 0 : index
    %c128 = arith.constant 128 : index
    %1 = vector.load %arg6[%c0_1, %c128] : memref<1x576xf32, #tpu.memory_space<vmem>>, vector<1x64xf32>
    %c0_2 = arith.constant 0 : index
    %c256 = arith.constant 256 : index
    %2 = vector.load %arg6[%c0_2, %c256] : memref<1x576xf32, #tpu.memory_space<vmem>>, vector<1x1xf32>
    %c0_3 = arith.constant 0 : index
    %c384 = arith.constant 384 : index
    %3 = vector.load %arg6[%c0_3, %c384] : memref<1x576xf32, #tpu.memory_space<vmem>>, vector<1x192xf32>
    %c0_4 = arith.constant 0 : index
    %c0_5 = arith.constant 0 : index
    %4 = vector.load %arg1[%c0_4, %c0_5] : memref<8x22xf32, #tpu.memory_space<vmem>>, vector<8x10xf32>
    %5 = arith.fptosi %4 : vector<8x10xf32> to vector<8x10xi32>
    %c0_i32 = arith.constant 0 : i32
    %c15_i32 = arith.constant 15 : i32
    %6 = vector.broadcast %c0_i32 : i32 to vector<8x10xi32>
    %7 = arith.maxsi %6, %5 : vector<8x10xi32>
    %8 = vector.broadcast %c15_i32 : i32 to vector<8x10xi32>
    %9 = arith.minsi %8, %7 : vector<8x10xi32>
    %c0_6 = arith.constant 0 : index
    %c10 = arith.constant 10 : index
    %10 = vector.load %arg1[%c0_6, %c10] : memref<8x22xf32, #tpu.memory_space<vmem>>, vector<8x12xf32>
    %11 = arith.truncf %10 : vector<8x12xf32> to vector<8x12xbf16>
    %c0_7 = arith.constant 0 : index
    %c0_8 = arith.constant 0 : index
    %12 = vector.load %arg2[%c0_7, %c0_8] : memref<12x64xbf16, #tpu.memory_space<vmem>>, vector<12x64xbf16>
    %cst = arith.constant dense<0.000000e+00> : vector<8x64xf32>
    %13 = tpu.matmul %11, %12, %cst {dimension_numbers = #tpu.dot_dimension_numbers<[1], [0], [0], [1], [0, 0, 1, 1], [], []>} : vector<8x12xbf16>, vector<12x64xbf16>, vector<8x64xf32> -> vector<8x64xf32>
    %14 = vector.broadcast %0 : vector<1x64xf32> to vector<8x64xf32>
    %15 = arith.addf %13, %14 : vector<8x64xf32>
    %cst_9 = arith.constant 0.000000e+00 : f32
    %16 = vector.broadcast %cst_9 : f32 to vector<8x64xf32>
    %17 = arith.maximumf %15, %16 : vector<8x64xf32>
    %18 = arith.truncf %17 : vector<8x64xf32> to vector<8x64xbf16>
    %c0_10 = arith.constant 0 : index
    %c0_11 = arith.constant 0 : index
    %19 = vector.load %arg3[%c0_10, %c0_11] : memref<64x192xbf16, #tpu.memory_space<vmem>>, vector<64x192xbf16>
    %cst_12 = arith.constant dense<0.000000e+00> : vector<8x192xf32>
    %20 = tpu.matmul %18, %19, %cst_12 {dimension_numbers = #tpu.dot_dimension_numbers<[1], [0], [0], [1], [0, 0, 1, 1], [], []>} : vector<8x64xbf16>, vector<64x192xbf16>, vector<8x192xf32> -> vector<8x192xf32>
    %21 = vector.broadcast %3 : vector<1x192xf32> to vector<8x192xf32>
    %22 = arith.addf %20, %21 : vector<8x192xf32>
    %cst_13 = arith.constant 0.000000e+00 : f32
    %23 = vector.broadcast %cst_13 : f32 to vector<8x192xf32>
    %24 = arith.maximumf %22, %23 : vector<8x192xf32>
    %25 = tpu.iota {dimensions = array<i32: 1>} : vector<1x10xi32>
    %c16_i32 = arith.constant 16 : i32
    %26 = vector.broadcast %c16_i32 : i32 to vector<1x10xi32>
    %27 = arith.muli %25, %26 : vector<1x10xi32>
    %28 = vector.broadcast %27 : vector<1x10xi32> to vector<8x10xi32>
    %29 = arith.addi %9, %28 : vector<8x10xi32>
    %30 = tpu.iota {dimensions = array<i32: 1>} : vector<8x192xi32>
    %31 = vector.extract_strided_slice %29 {offsets = [0, 0], sizes = [8, 1], strides = [1, 1]} : vector<8x10xi32> to vector<8x1xi32>
    %32 = vector.broadcast %31 : vector<8x1xi32> to vector<8x192xi32>
    %33 = arith.cmpi eq, %30, %32 : vector<8x192xi32>
    %34 = vector.extract_strided_slice %29 {offsets = [0, 1], sizes = [8, 1], strides = [1, 1]} : vector<8x10xi32> to vector<8x1xi32>
    %35 = vector.broadcast %34 : vector<8x1xi32> to vector<8x192xi32>
    %36 = arith.cmpi eq, %30, %35 : vector<8x192xi32>
    %37 = arith.ori %33, %36 : vector<8x192xi1>
    %38 = vector.extract_strided_slice %29 {offsets = [0, 2], sizes = [8, 1], strides = [1, 1]} : vector<8x10xi32> to vector<8x1xi32>
    %39 = vector.broadcast %38 : vector<8x1xi32> to vector<8x192xi32>
    %40 = arith.cmpi eq, %30, %39 : vector<8x192xi32>
    %41 = arith.ori %37, %40 : vector<8x192xi1>
    %42 = vector.extract_strided_slice %29 {offsets = [0, 3], sizes = [8, 1], strides = [1, 1]} : vector<8x10xi32> to vector<8x1xi32>
    %43 = vector.broadcast %42 : vector<8x1xi32> to vector<8x192xi32>
    %44 = arith.cmpi eq, %30, %43 : vector<8x192xi32>
    %45 = arith.ori %41, %44 : vector<8x192xi1>
    %46 = vector.extract_strided_slice %29 {offsets = [0, 4], sizes = [8, 1], strides = [1, 1]} : vector<8x10xi32> to vector<8x1xi32>
    %47 = vector.broadcast %46 : vector<8x1xi32> to vector<8x192xi32>
    %48 = arith.cmpi eq, %30, %47 : vector<8x192xi32>
    %49 = arith.ori %45, %48 : vector<8x192xi1>
    %50 = vector.extract_strided_slice %29 {offsets = [0, 5], sizes = [8, 1], strides = [1, 1]} : vector<8x10xi32> to vector<8x1xi32>
    %51 = vector.broadcast %50 : vector<8x1xi32> to vector<8x192xi32>
    %52 = arith.cmpi eq, %30, %51 : vector<8x192xi32>
    %53 = arith.ori %49, %52 : vector<8x192xi1>
    %54 = vector.extract_strided_slice %29 {offsets = [0, 6], sizes = [8, 1], strides = [1, 1]} : vector<8x10xi32> to vector<8x1xi32>
    %55 = vector.broadcast %54 : vector<8x1xi32> to vector<8x192xi32>
    %56 = arith.cmpi eq, %30, %55 : vector<8x192xi32>
    %57 = arith.ori %53, %56 : vector<8x192xi1>
    %58 = vector.extract_strided_slice %29 {offsets = [0, 7], sizes = [8, 1], strides = [1, 1]} : vector<8x10xi32> to vector<8x1xi32>
    %59 = vector.broadcast %58 : vector<8x1xi32> to vector<8x192xi32>
    %60 = arith.cmpi eq, %30, %59 : vector<8x192xi32>
    %61 = arith.ori %57, %60 : vector<8x192xi1>
    %62 = vector.extract_strided_slice %29 {offsets = [0, 8], sizes = [8, 1], strides = [1, 1]} : vector<8x10xi32> to vector<8x1xi32>
    %63 = vector.broadcast %62 : vector<8x1xi32> to vector<8x192xi32>
    %64 = arith.cmpi eq, %30, %63 : vector<8x192xi32>
    %65 = arith.ori %61, %64 : vector<8x192xi1>
    %66 = vector.extract_strided_slice %29 {offsets = [0, 9], sizes = [8, 1], strides = [1, 1]} : vector<8x10xi32> to vector<8x1xi32>
    %67 = vector.broadcast %66 : vector<8x1xi32> to vector<8x192xi32>
    %68 = arith.cmpi eq, %30, %67 : vector<8x192xi32>
    %69 = arith.ori %65, %68 : vector<8x192xi1>
    %cst_14 = arith.constant 1.000000e+00 : f32
    %70 = vector.broadcast %cst_14 : f32 to vector<8x192xf32>
    %71 = arith.select %69, %70, %24 : vector<8x192xi1>, vector<8x192xf32>
    %72 = arith.truncf %71 : vector<8x192xf32> to vector<8x192xbf16>
    %c0_15 = arith.constant 0 : index
    %c0_16 = arith.constant 0 : index
    %73 = vector.load %arg4[%c0_15, %c0_16] : memref<192x64xbf16, #tpu.memory_space<vmem>>, vector<192x64xbf16>
    %cst_17 = arith.constant dense<0.000000e+00> : vector<8x64xf32>
    %74 = tpu.matmul %72, %73, %cst_17 {dimension_numbers = #tpu.dot_dimension_numbers<[1], [0], [0], [1], [0, 0, 1, 1], [], []>} : vector<8x192xbf16>, vector<192x64xbf16>, vector<8x64xf32> -> vector<8x64xf32>
    %75 = vector.broadcast %1 : vector<1x64xf32> to vector<8x64xf32>
    %76 = arith.addf %74, %75 : vector<8x64xf32>
    %cst_18 = arith.constant 0.000000e+00 : f32
    %77 = vector.broadcast %cst_18 : f32 to vector<8x64xf32>
    %78 = arith.maximumf %76, %77 : vector<8x64xf32>
    %79 = arith.truncf %78 : vector<8x64xf32> to vector<8x64xbf16>
    %c0_19 = arith.constant 0 : index
    %c0_20 = arith.constant 0 : index
    %80 = vector.load %arg5[%c0_19, %c0_20] : memref<64x1xbf16, #tpu.memory_space<vmem>>, vector<64x1xbf16>
    %cst_21 = arith.constant dense<0.000000e+00> : vector<8x1xf32>
    %81 = tpu.matmul %79, %80, %cst_21 {dimension_numbers = #tpu.dot_dimension_numbers<[1], [0], [0], [1], [0, 0, 1, 1], [], []>} : vector<8x64xbf16>, vector<64x1xbf16>, vector<8x1xf32> -> vector<8x1xf32>
    %82 = vector.broadcast %2 : vector<1x1xf32> to vector<8x1xf32>
    %83 = arith.addf %81, %82 : vector<8x1xf32>
    %84 = arith.negf %83 : vector<8x1xf32>
    %85 = math.exp %84 : vector<8x1xf32>
    %cst_22 = arith.constant 1.000000e+00 : f32
    %86 = vector.broadcast %cst_22 : f32 to vector<8x1xf32>
    %87 = arith.addf %86, %85 : vector<8x1xf32>
    %88 = arith.divf %86, %87 : vector<8x1xf32>
    %c0_23 = arith.constant 0 : index
    %c0_24 = arith.constant 0 : index
    %89 = vector.load %arg7[%c0_23, %c0_24] : memref<8x1xf32, #tpu.memory_space<vmem>>, vector<8x1xf32>
    tpu.vector_store %arg7[%c0_23, %c0_24], %88 {strides = array<i32>} : memref<8x1xf32, #tpu.memory_space<vmem>>, vector<8x1xf32>,
    return
  }
  func.func @transform_0(%arg0: i32) -> (i32, i32) {
    %c0_i32 = arith.constant 0 : i32
    %c0_i32_0 = arith.constant 0 : i32
    return %arg0, %c0_i32 : i32, i32
  }
  func.func @transform_1(%arg0: i32) -> (i32, i32) {
    %c0_i32 = arith.constant 0 : i32
    %c0_i32_0 = arith.constant 0 : i32
    %c0_i32_1 = arith.constant 0 : i32
    return %c0_i32, %c0_i32_0 : i32, i32
  }
  func.func @transform_2(%arg0: i32) -> (i32, i32) {
    %c0_i32 = arith.constant 0 : i32
    %c0_i32_0 = arith.constant 0 : i32
    %c0_i32_1 = arith.constant 0 : i32
    return %c0_i32, %c0_i32_0 : i32, i32
  }
  func.func @transform_3(%arg0: i32) -> (i32, i32) {
    %c0_i32 = arith.constant 0 : i32
    %c0_i32_0 = arith.constant 0 : i32
    %c0_i32_1 = arith.constant 0 : i32
    return %c0_i32, %c0_i32_0 : i32, i32
  }
  func.func @transform_4(%arg0: i32) -> (i32, i32) {
    %c0_i32 = arith.constant 0 : i32
    %c0_i32_0 = arith.constant 0 : i32
    %c0_i32_1 = arith.constant 0 : i32
    return %c0_i32, %c0_i32_0 : i32, i32
  }
  func.func @transform_5(%arg0: i32) -> (i32, i32) {
    %c0_i32 = arith.constant 0 : i32
    %c0_i32_0 = arith.constant 0 : i32
    %c0_i32_1 = arith.constant 0 : i32
    return %c0_i32, %c0_i32_0 : i32, i32
  }
  func.func @transform_6(%arg0: i32) -> (i32, i32) {
    %c0_i32 = arith.constant 0 : i32
    %c0_i32_0 = arith.constant 0 : i32
    return %arg0, %c0_i32 : i32, i32
  }
}

</mosaic_0001>

<bundles_post_ra>
// kernel: tpu_custom_call.1
= control target key start
LH: loop header
LB: loop body
LE: loop exit
PB: predicated region body
PF: predicated region fallthrough
CT: control target
= control target key end

     0   :  { %v641_v1 = vmov 0.0   ;;  %vm55_vm0 = vcmask 1045504   ;;  %vm642_vm1 = vmmov 0   ;;  %s643_s27 = smov 118   ;;  %vm51_vm2 = vcmask 97280   ;;  %s824_s0 = inlined_call_operand.vmem [shape: f32[8,22], index: 0, kind: input, shape index: {}]   ;;  %s825_s1 = inlined_call_operand.vmem [shape: bf16[12,64], index: 1, kind: input, shape index: {}]   ;;  %s826_s2 = inlined_call_operand.vmem [shape: bf16[64,192], index: 2, kind: input, shape index: {}]   ;;  %s827_s3 = inlined_call_operand.vmem [shape: bf16[192,64], index: 3, kind: input, shape index: {}]   ;;  %s828_s5 = inlined_call_operand.vmem [shape: f32[1,576], index: 5, kind: input, shape index: {}]   ;;  %s829_s4 = inlined_call_operand.vmem [shape: bf16[64,1], index: 4, kind: input, shape index: {}]   ;;  %s830_s6 = inlined_call_operand.vmem [shape: f32[8,1], index: 6, kind: output, shape index: {}]  }
   0x1   :  { %v28_v0 = vld [vmem:[%s824_s0] sm:$0xff]  ;;  %564 = vmatprep.subr.bf16.mxu1 %v641_v1  ;;  %566 = vmatprep.mubr.msk.bf16.mxu1 %vm642_vm1, %v641_v1  ;;  %v614_v7 = vld [vmem:[%s826_s2 + $0x14] ss:$8 sps:$4 sm:$0xff]   ;;  %v612_v9 = vld [vmem:[%s826_s2 + $0x10] ss:$8 sps:$4 sm:$0xff]   ;;  %v110_v14 = vlaneseq  ;;  %v644_v22 = vmov 0  }
   0x2   :  { %v34_v2 = vpack.c.bf16 %v28_v0, %v28_v0  ;;  %v608_v3 = vld [vmem:[%s825_s1] sm:$0x3f]   ;;  %v582_v12 = vtrunc.f32 %v28_v0  ;;  %v620_v18 = vld [vmem:[%s826_s2 + $0x34] ss:$8 sps:$4 sm:$0xff]   ;;  %v618_v20 = vld [vmem:[%s826_s2 + $0x30] ss:$8 sps:$4 sm:$0xff]   ;;  %597 = vset.pattern.permute.xlu0 %v644_v22  ;;  %389 = vmatprep.subr.bf16.mxu0 %v644_v22 }
   0x3   :  { %v611_v4 = vld [vmem:[%s826_s2 + $0x4] ss:$8 sps:$4 sm:$0xff]   ;;  %v57_v5 = vsel %vm55_vm0, %v608_v3, 0  ;;  %v609_v6 = vld [vmem:[%s826_s2] ss:$8 sps:$4 sm:$0xff]   ;;  %v717_v16 = vand.u32 127, %v110_v14 }
   0x4   :  { %44 = vrot.lane.b32.xlu0 %v34_v2, %s643_s27  ;;  %565 = vmatpush3.bf16.msra.mxu1 %v57_v5  ;;  %v617_v10 = vld [vmem:[%s826_s2 + $0x24] ss:$8 sps:$4 sm:$0xff]   ;;  %v615_v11 = vld [vmem:[%s826_s2 + $0x20] ss:$8 sps:$4 sm:$0xff]   ;;  %v583_v13 = vcvt.f32.s32 %v582_v12  ;;  %v645_v23 = vmov 1   ;;  %v646_v24 = vmov 4  }
   0x5   :  { %164 = vmatprep.subr.bf16.mxu1 %v611_v4  ;;  %v209_v17 = vmul.u32 16, %v717_v16  ;;  %598 = vset.pattern.permute.xlu1 %v645_v23  ;;  %v647_v25 = vmov 2   ;;  %v621_v26 = vld [vmem:[%s827_s3] sm:$0xff]   ;;  %v648_v27 = vmov 7   ;;  %v649_v28 = vmov 3   ;;  %v622_v29 = vld [vmem:[%s827_s3 + $0x8] sm:$0xff]  }
   0x6   :  { %vm30_vm3 = vcmp.gt.s32.totalorder %v583_v13, 0  ;;  %390 = vmatpush1.bf16.msra.mxu0 %v621_v26  ;;  %v650_v30 = vmov 9   ;;  %v651_v31 = vmov 5   ;;  %v623_v32 = vld [vmem:[%s827_s3 + $0x10] sm:$0xff]   ;;  %v652_v33 = vmov 6   ;;  %v624_v34 = vld [vmem:[%s827_s3 + $0x18] sm:$0xff]  }
   0x7   :  { %v31_v15 = vsel %vm30_vm3, %v583_v13, 0  ;;  %391 = vmatprep.subr.bf16.mxu0 %v644_v22  ;;  %v653_v35 = vmov 8   ;;  %v625_v36 = vld [vmem:[%s827_s3 + $0x20] sm:$0xff]   ;;  %v626_v37 = vld [vmem:[%s827_s3 + $0x28] sm:$0xff]   ;;  %v627_v38 = vld [vmem:[%s827_s3 + $0x30] sm:$0xff]   ;;  %vm831_vm5 = vcmask 523264  }
   0x8   :  { %vm32_vm4 = vcmp.lt.s32.totalorder %v31_v15, 15  ;;  %v628_v39 = vld [vmem:[%s827_s3 + $0x38] sm:$0xff]   ;;  %v629_v40 = vld [vmem:[%s827_s3 + $0x40] sm:$0xff]   ;;  %v630_v41 = vld [vmem:[%s827_s3 + $0x48] sm:$0xff]   ;;  %v211_v56 = vadd.s32 128, %v717_v16  ;;  %v111_v62 = vshrl.u32 %v110_v14, 7 }
   0x9   :  { %v33_v19 = vsel %vm32_vm4, %v31_v15, 15  ;;  %v524_v42 = vld [vmem:[%s828_s5] ss:$0 sm:$0xff]  ;;  %v631_v50 = vld [vmem:[%s827_s3 + $0x50] sm:$0xff]   ;;  %v632_v51 = vld [vmem:[%s827_s3 + $0x58] sm:$0xff]  }
   0xa   :  { %v210_v21 = vadd.s32 %v209_v17, %v33_v19  ;;  %392 = vmatpush1.bf16.msra.mxu0 %v622_v29  ;;  %v633_v52 = vld [vmem:[%s829_s4] sm:$0xff]   ;;  %v634_v53 = vld [vmem:[%s829_s4 + $0x8] sm:$0xff]   ;;  %v112_v2 = vsub.s32 0, %v111_v62  ;;  %v116_v4 = vsub.s32 1, %v111_v62 }
   0xb   :  { %393 = vmatprep.subr.bf16.mxu0 %v644_v22  ;;  %v27_v3 = vld [vmem:[%s828_s5 + $0x3] sm:$0x3] }
   0xc   :  { %213 = vperm.xlu0 %597, %v210_v21   ;;  %218 = vperm.xlu1 %598, %v210_v21   ;;  %v113_v5 = vrot.slane %v27_v3, %v112_v2 }
   0xe   :  { %394 = vmatpush1.bf16.msra.mxu0 %v623_v32 }
   0xf   :  { %395 = vmatprep.subr.bf16.mxu0 %v644_v22 }
  0x10   :  { %601 = vset.pattern.permute.xlu0 %v646_v24  ;;  %599 = vset.pattern.permute.xlu1 %v647_v25 }
  0x11   :  { %239 = vperm.xlu0 %601, %v210_v21   ;;  %225 = vperm.xlu1 %599, %v210_v21  }
  0x12   :  { %396 = vmatpush1.bf16.msra.mxu0 %v624_v34 }
  0x13   :  { %397 = vmatprep.subr.bf16.mxu0 %v644_v22 }
  0x15   :  { %604 = vset.pattern.permute.xlu0 %v648_v27  ;;  %600 = vset.pattern.permute.xlu1 %v649_v28 }
  0x16   :  { %260 = vperm.xlu0 %604, %v210_v21   ;;  %232 = vperm.xlu1 %600, %v210_v21  }
  0x17   :  { %398 = vmatpush1.bf16.msra.mxu0 %v625_v36 }
  0x18   :  { %399 = vmatprep.subr.bf16.mxu0 %v644_v22 }
  0x1a   :  { %607 = vset.pattern.permute.xlu0 %v650_v30  ;;  %602 = vset.pattern.permute.xlu1 %v651_v31 }
  0x1b   :  { %246 = vperm.xlu1 %602, %v210_v21   ;;  %400 = vmatpush1.bf16.msra.mxu0 %v626_v37 }
  0x1c   :  { %401 = vmatprep.subr.bf16.mxu0 %v644_v22 }
  0x1f   :  { %603 = vset.pattern.permute.xlu1 %v652_v33  ;;  %402 = vmatpush1.bf16.msra.mxu0 %v627_v38 }
  0x20   :  { %253 = vperm.xlu1 %603, %v210_v21   ;;  %403 = vmatprep.subr.bf16.mxu0 %v644_v22 }
  0x23   :  { %404 = vmatpush1.bf16.msra.mxu0 %v628_v39 }
  0x24   :  { %605 = vset.pattern.permute.xlu1 %v653_v35  ;;  %405 = vmatprep.subr.bf16.mxu0 %v644_v22 }
  0x25   :  { %267 = vperm.xlu1 %605, %v210_v21  }
  0x27   :  { %406 = vmatpush1.bf16.msra.mxu0 %v629_v40 }
  0x28   :  { %407 = vmatprep.subr.bf16.mxu0 %v644_v22 }
  0x29   :  { %606 = vset.pattern.permute.xlu1 %v650_v30 }
  0x2a   :  { %274 = vperm.xlu1 %606, %v210_v21   ;;  %v636_v21 = vld [vmem:[%s829_s4 + $0x18] sm:$0xff]  }
  0x2b   :  { %408 = vmatpush1.bf16.msra.mxu0 %v630_v41 }
  0x2c   :  { %409 = vmatprep.subr.bf16.mxu0 %v644_v22 }
  0x2f   :  { %410 = vmatpush1.bf16.msra.mxu0 %v631_v50 }
  0x30   :  { %411 = vmatprep.subr.bf16.mxu0 %v644_v22 }
  0x33   :  { %412 = vmatpush1.bf16.msra.mxu0 %v632_v51 }
  0x76   :  { %v45_v8 = vpop.permute.xlu0 %44 }
  0x77   :  { %567 = vmatmul.mubr.msk.bf16.vlgmr.msra.gmra.mrb[0].mxu1 %vm51_vm2, %v45_v8 }
  0x78   :  { %165 = vmatpush1.bf16.msra.mxu1 %v609_v6  ;;  %196 = vmatprep.mubr.bf16.mxu1 %v644_v22  ;;  %v536_v22 = vld [vmem:[%s828_s5 + $0x1] ss:$0 sm:$0xff] }
  0x79   :  { %166 = vmatprep.subr.bf16.mxu1 %v614_v7  ;;  %v117_v7 = vrot.slane %v27_v3, %v116_v4 }
  0x7c   :  { %167 = vmatpush1.bf16.msra.mxu1 %v612_v9 }
  0x7d   :  { %168 = vmatprep.subr.bf16.mxu1 %v617_v10 }
  0x80   :  { %169 = vmatpush1.bf16.msra.mxu1 %v615_v11 }
  0x81   :  { %170 = vmatprep.subr.bf16.mxu1 %v620_v18 }
  0x84   :  { %171 = vmatpush1.bf16.msra.mxu1 %v618_v20 }
  0x85   :  { %570 = vmatprep.subr.bf16.mxu1 %v641_v1 }
  0x8b   :  { %v219_v54 = vpop.permute.xlu1 %218  ;;  %v214_v58 = vpop.permute.xlu0 %213 }
  0x8c   :  { %vm220_vm6 = vcmp.eq.s32.totalorder %v717_v16, %v219_v54  ;;  %vm215_vm7 = vcmp.eq.s32.totalorder %v717_v16, %v214_v58  ;;  %vm221_vm8 = vcmp.eq.s32.totalorder %v211_v56, %v219_v54  ;;  %vm216_vm9 = vcmp.eq.s32.totalorder %v211_v56, %v214_v58 }
  0x8d   :  { %vm222_vm11 = vmor %vm215_vm7, %vm220_vm6 }
  0x8e   :  { %vm223_vm13 = vmor %vm216_vm9, %vm221_vm8 }
  0x90   :  { %v226_v55 = vpop.permute.xlu1 %225  ;;  %v240_v60 = vpop.permute.xlu0 %239 }
  0x91   :  { %vm227_vm10 = vcmp.eq.s32.totalorder %v717_v16, %v226_v55  ;;  %vm228_vm12 = vcmp.eq.s32.totalorder %v211_v56, %v226_v55  ;;  %vm241_vm3 = vcmp.eq.s32.totalorder %v717_v16, %v240_v60 }
  0x92   :  { %vm229_vm15 = vmor %vm222_vm11, %vm227_vm10 }
  0x95   :  { %v233_v57 = vpop.permute.xlu1 %232  ;;  %v261_v0 = vpop.permute.xlu0 %260 }
  0x96   :  { %vm234_vm14 = vcmp.eq.s32.totalorder %v717_v16, %v233_v57  ;;  %vm235_vm0 = vcmp.eq.s32.totalorder %v211_v56, %v233_v57 }
  0x97   :  { %vm236_vm2 = vmor %vm229_vm15, %vm234_vm14  ;;  %vm262_vm15 = vcmp.eq.s32.totalorder %v717_v16, %v261_v0 }
  0x98   :  { %vm243_vm7 = vmor %vm236_vm2, %vm241_vm3 }
  0x9a   :  { %v247_v59 = vpop.permute.xlu1 %246 }
  0x9b   :  { %vm248_vm6 = vcmp.eq.s32.totalorder %v717_v16, %v247_v59  ;;  %vm249_vm8 = vcmp.eq.s32.totalorder %v211_v56, %v247_v59 }
  0x9c   :  { %vm250_vm11 = vmor %vm243_vm7, %vm248_vm6 }
  0x9f   :  { %v254_v61 = vpop.permute.xlu1 %253 }
  0xa0   :  { %vm255_vm10 = vcmp.eq.s32.totalorder %v717_v16, %v254_v61 }
  0xa1   :  { %vm257_vm14 = vmor %vm250_vm11, %vm255_vm10 }
  0xa2   :  { %vm264_vm2 = vmor %vm257_vm14, %vm262_vm15  ;;  %vm518_vm14 = vcmask 7168  }
  0xa4   :  { %v268_v63 = vpop.permute.xlu1 %267 }
  0xa5   :  { %vm270_vm3 = vcmp.eq.s32.totalorder %v211_v56, %v268_v63 }
  0xa9   :  { %v275_v6 = vpop.permute.xlu1 %274 }
  0xaa   :  { %vm276_vm7 = vcmp.eq.s32.totalorder %v717_v16, %v275_v6 }
 0x14a   :  { %v93_v43 = vpop.f32.mrb[0].mxu1 }
 0x14b   :  { %v94_v44 = vadd.f32 %v524_v42, %v93_v43  ;;  %v568_v45 = vpop.f32.mrb[1].mxu1 }
 0x14c   :  { %v96_v46 = vpop.f32.mrb[2].mxu1 }
 0x14d   :  { %v99_v47 = vmax.f32 %v94_v44, 0.0  ;;  %v569_v48 = vpop.f32.mrb[3].mxu1 }
 0x14f   :  { %v100_v49 = vpack.c.bf16 %v99_v47, %v99_v47 }
 0x151   :  { %535 = vmatmul.mubr.msk.bf16.vlgmr.msra.gmra.mrb[4].mxu1 %vm831_vm5, %v100_v49  ;;  %vm242_vm5 = vcmp.eq.s32.totalorder %v211_v56, %v240_v60 }
 0x152   :  { %578 = vmatprep.mubr.msk.bf16.mxu1 %vm642_vm1, %v641_v1  ;;  %571 = vmatpush3.bf16.msra.mxu1 %v633_v52  ;;  %vm230_vm1 = vmor %vm223_vm13, %vm228_vm12  ;;  %vm256_vm12 = vcmp.eq.s32.totalorder %v211_v56, %v254_v61 }
 0x153   :  { %572 = vmatprep.subr.bf16.mxu1 %v641_v1  ;;  %vm237_vm4 = vmor %vm230_vm1, %vm235_vm0  ;;  %vm263_vm1 = vcmp.eq.s32.totalorder %v211_v56, %v261_v0 }
 0x154   :  { %vm244_vm9 = vmor %vm237_vm4, %vm242_vm5  ;;  %vm269_vm5 = vcmp.eq.s32.totalorder %v717_v16, %v268_v63  ;;  %v635_v16 = vld [vmem:[%s829_s4 + $0x10] sm:$0xff]  }
 0x155   :  { %vm251_vm13 = vmor %vm244_vm9, %vm249_vm8  ;;  %vm277_vm9 = vcmp.eq.s32.totalorder %v211_v56, %v275_v6 }
 0x156   :  { %573 = vmatpush3.bf16.msra.mxu1 %v634_v53  ;;  %vm258_vm0 = vmor %vm251_vm13, %vm256_vm12  ;;  %vm832_vm12 = vcmask 523264  }
 0x157   :  { %574 = vmatprep.subr.bf16.mxu1 %v641_v1  ;;  %vm265_vm4 = vmor %vm258_vm0, %vm263_vm1 }
 0x158   :  { %vm271_vm6 = vmor %vm264_vm2, %vm269_vm5 }
 0x159   :  { %vm272_vm8 = vmor %vm265_vm4, %vm270_vm3 }
 0x15a   :  { %vm278_vm10 = vmor %vm271_vm6, %vm276_vm7  ;;  %575 = vmatpush3.bf16.msra.mxu1 %v635_v16 }
 0x15b   :  { %vm279_vm11 = vmor %vm272_vm8, %vm277_vm9  ;;  %576 = vmatprep.subr.bf16.mxu1 %v641_v1  ;;  %v550_v1 = vld [vmem:[%s828_s5 + $0x2] ss:$0 sm:$0xff] }
 0x15c   :  { %vm833_vm13 = vmmov %vm832_vm12 }
 0x15e   :  { %577 = vmatpush3.bf16.msra.mxu1 %v636_v21 }
 0x224   :  { %v198_v8 = vpop.f32.mrb[4].mxu1 }
 0x225   :  { %v199_v9 = vadd.f32 %v198_v8, %v113_v5  ;;  %v200_v10 = vpop.f32.mrb[5].mxu1 }
 0x226   :  { %v201_v11 = vadd.f32 %v200_v10, %v117_v7  ;;  %v202_v12 = vpop.f32.mrb[6].mxu1 }
 0x227   :  { %v205_v13 = vmax.f32 %v199_v9, 0.0  ;;  %v203_v14 = vpop.f32.mrb[7].mxu1 }
 0x228   :  { %v206_v15 = vmax.f32 %v201_v11, 0.0 }
 0x229   :  { %v280_v17 = vsel %vm278_vm10, 1.0, %v205_v13 }
 0x22a   :  { %v281_v18 = vsel %vm279_vm11, 1.0, %v206_v15  ;;  %v282_v20 = vpack.c.bf16 %v280_v17, %v280_v17 }
 0x22b   :  { %v283_v19 = vpack.c.bf16 %v281_v18, %v281_v18 }
 0x22d   :  { %549 = vmatprep.mubr.msk.bf16.mxu0 %vm832_vm12, %v283_v19 }
 0x22e   :  { %422 = vmatmul.mubr.bf16.vlgmr.msra.gmra.mrb[0].mxu0 %v282_v20 }
 0x301   :  { %v423_v23 = vpop.f32.mrb[0].mxu0 }
 0x302   :  { %v424_v24 = vadd.f32 %v536_v22, %v423_v23  ;;  %v425_v25 = vpop.f32.mrb[1].mxu0 }
 0x303   :  { %v426_v26 = vpop.f32.mrb[2].mxu0 }
 0x304   :  { %v429_v27 = vmax.f32 %v424_v24, 0.0  ;;  %v427_v28 = vpop.f32.mrb[3].mxu0 }
 0x306   :  { %v430_v29 = vpack.c.bf16 %v429_v27, %v429_v27 }
 0x308   :  { %579 = vmatmul.mubr.msk.bf16.vlgmr.msra.gmra.mrb[8].mxu1 %vm833_vm13, %v430_v29 }
 0x3db   :  { %v506_v30 = vpop.f32.mrb[8].mxu1 }
 0x3dc   :  { %v507_v31 = vadd.f32 %v550_v1, %v506_v30  ;;  %v580_v32 = vpop.f32.mrb[9].mxu1 }
 0x3dd   :  { %v509_v33 = vpop.f32.mrb[10].mxu1 }
 0x3de   :  { %v556_v34 = vmul.f32 -1.442695, %v507_v31  ;;  %v581_v35 = vpop.f32.mrb[11].mxu1 }
 0x3e0   :  { %637 = vpow2.f32 %v556_v34 }
 0x3ea   :  { %v638_v36 = vpop.eup %637 }
 0x3eb   :  { %v515_v37 = vadd.f32 1.0, %v638_v36 }
 0x3ed   :  { %639 = vrcp.f32 %v515_v37 }
 0x3f7   :  { %v640_v38 = vpop.eup %639 }
 0x3f8   :  { %519 = vst.msk [vmem:[%s830_s6] sm:$0xff] %vm518_vm14, %v640_v38 }

</bundles_post_ra>
